<compile_context>
chip_gen: v7x
topology: tpu7x:2x2x1
jax: 0.10.0
libtpu: 0.0.40
codegen_flags: <defaults>
</compile_context>

<pallas_src>
import math
import jax
import jax.numpy as jnp
from jax.experimental import pallas as pl
from jax.experimental.pallas import tpu as pltpu


def autoencoder_kernel(x_ref, *args):
    """Whole encoder+decoder chain for one (bt, F) batch tile, entirely in VMEM.

    x_ref:   (bt, F)   natural (batch, feature) layout straight from HBM
    params:  w0, b0, ..., w9, b9 where
               w0..w8  = (out, in)   (PyTorch nn.Linear layout)
               b0..b8  = (out, 1)    (column, broadcast over lanes)
               w9      = (in, out)   (pre-transposed in the wrapper)
               b9      = (1, out)    (row, broadcast over sublanes)
    out_ref: (bt, F)   natural layout, stored directly
    """
    out_ref = args[-1]
    params = args[:-1]
    n_layers = len(params) // 2
    latent_idx = n_layers // 2 - 1          # no ReLU after the latent projection

    x = x_ref[...].astype(jnp.float32)      # (bt, F)

    # ---- Layer 0: fold (bt, F) -> (F-major) layout change into the MXU op ----
    # h = W0 @ x^T  ==  einsum('oi,bi->ob')  (A @ B^T contraction, no explicit
    # transpose / extra HBM pass; batch ends up on the 128-wide lane axis).
    w0 = params[0][...].astype(jnp.float32)                      # (64, F)
    b0 = params[1][...].astype(jnp.float32)                      # (64, 1)
    h = jnp.einsum('oi,bi->ob', w0, x,
                   preferred_element_type=jnp.float32) + b0      # (64, bt)
    h = jnp.maximum(h, 0.0)

    # ---- Middle layers: stay in the lane-dense (features, batch) layout ----
    for i in range(1, n_layers - 1):
        w = params[2 * i][...].astype(jnp.float32)               # (out, in)
        b = params[2 * i + 1][...].astype(jnp.float32)           # (out, 1)
        h = jnp.dot(w, h, preferred_element_type=jnp.float32) + b
        if i != latent_idx:
            h = jnp.maximum(h, 0.0)

    # ---- Last layer: fold the layout back to (batch, feature) ----
    # y = h^T @ W9^T  ==  einsum('ib,io->bo')  (A^T @ B contraction), so the
    # store is already in the caller's natural layout.  No ReLU on the output.
    w_l = params[-2][...].astype(jnp.float32)                    # (64, F) pre-transposed
    b_l = params[-1][...].astype(jnp.float32)                    # (1, F)
    y = jnp.einsum('ib,io->bo', h, w_l,
                   preferred_element_type=jnp.float32) + b_l     # (bt, F)
    out_ref[...] = y.astype(out_ref.dtype)


def init_params(key, input_shape, latent_shape, dtype=jnp.float32):
    """PyTorch-default-like nn.Linear init (uniform(+-1/sqrt(fan_in))).
    Weights are (out_features, in_features); biases are (out_features,)."""
    enc = [input_shape, 64, 32, 16, 8, latent_shape]
    dec = [latent_shape, 8, 16, 32, 64, input_shape]
    dims = list(zip(enc[:-1], enc[1:])) + list(zip(dec[:-1], dec[1:]))

    params = []
    for fan_in, fan_out in dims:
        key, kw, kb = jax.random.split(key, 3)
        bound = 1.0 / math.sqrt(fan_in)
        params.append(jax.random.uniform(kw, (fan_out, fan_in), dtype, -bound, bound))
        params.append(jax.random.uniform(kb, (fan_out,), dtype, -bound, bound))
    return params


def _prepare_kernel_params(params):
    """Reshape params into the forms the kernel broadcasts cheaply:
    column biases for the lane-dense middle chain, pre-transposed last weight
    and row bias for the natural-layout output store.  All ops here touch a
    few KiB of weights only (negligible vs. the batch-sized work)."""
    n_layers = len(params) // 2
    kparams = []
    for i in range(n_layers):
        w, b = params[2 * i], params[2 * i + 1]
        if i == n_layers - 1:
            kparams.append(w.T)                # (in, out)
            kparams.append(b.reshape(1, -1))   # (1, out)
        else:
            kparams.append(w)                  # (out, in)
            kparams.append(b.reshape(-1, 1))   # (out, 1)
    return kparams


def _round_up(n, m):
    return ((n + m - 1) // m) * m


def _cdiv(a, b):
    return -(-a // b)


def _choose_tiling(batch, max_tile):
    """Return (batch_tile, padded_batch).

    - tiles are multiples of 8 (sublane-aligned); large tiles amortize the
      ~0.35 us per-grid-step overhead,
    - prefers an even grid step count (v7x: 2 TensorCores over the "parallel"
      axis) and an exact split of the batch so no wrapper-side jnp.pad
      (an extra HBM pass) is needed,
    - falls back to a single tile / 512-aligned padded tiles otherwise.
    """
    b8 = _round_up(batch, 8)
    if b8 <= 1024:
        return b8, b8                                   # one small tile
    start = 2 * _cdiv(_cdiv(b8, max_tile), 2)           # smallest EVEN step count
    for steps in range(start, start + 257, 2):
        bt = b8 // steps
        if bt * steps == b8 and bt % 8 == 0:
            return bt, b8                               # exact, even, no padding
    if b8 <= max_tile:
        return b8, b8                                   # single tile, no padding
    bt = _round_up(_cdiv(b8, start), 512)
    return bt, start * bt                               # padded fallback


def autoencoder_forward(x, params, *, max_batch_tile=8192):
    """Forward pass.  x: (batch, input_shape) -> (batch, input_shape)."""
    B, F = x.shape
    bt, B_pad = _choose_tiling(B, max_batch_tile)
    if B_pad != B:
        # Padded rows become junk after bias/ReLU; they are sliced off below.
        x = jnp.pad(x, ((0, B_pad - B), (0, 0)))
    grid = (B_pad // bt,)

    kparams = _prepare_kernel_params(params)

    # (bt, F) blocks: F equals the full (last) array dim so it is legal even if
    # input_shape is not a multiple of 8/128 (it is just lane/sublane padded);
    # bt is always a multiple of 8.
    x_spec = pl.BlockSpec((bt, F), lambda i: (i, 0))
    out_spec = pl.BlockSpec((bt, F), lambda i: (i, 0))
    # Tiny grid-invariant parameters: full-array blocks, constant index_map ->
    # DMA'd once, resident in VMEM across all grid steps.
    # (Packing the 20 operands into 1-2 slabs is a possible further tweak, but
    #  with only a handful of grid steps the per-operand bookkeeping is noise.)
    param_specs = [pl.BlockSpec(p.shape, lambda i: (0, 0)) for p in kparams]

    itemsize = jnp.dtype(x.dtype).itemsize
    weight_elems = sum(int(w.size) for w in params[0::2])
    cost = pl.CostEstimate(
        flops=2 * B_pad * weight_elems,
        transcendentals=0,
        bytes_accessed=2 * B_pad * F * itemsize
        + sum(int(p.size) * jnp.dtype(p.dtype).itemsize for p in kparams),
    )

    out = pl.pallas_call(
        autoencoder_kernel,
        out_shape=jax.ShapeDtypeStruct((B_pad, F), x.dtype),
        grid=grid,
        in_specs=[x_spec] + param_specs,
        out_specs=out_spec,
        compiler_params=pltpu.CompilerParams(
            # Batch-tile axis is embarrassingly parallel (v7x megacore sharding).
            dimension_semantics=("parallel",),
            # Peak VMEM is < ~8 MiB at bt=8192 (in/out double buffers + params +
            # chained intermediates), under every generation's scoped default,
            # so no vmem_limit_bytes override is required.
        ),
        cost_estimate=cost,
    )(x, *kparams)

    return out if B_pad == B else out[:B]


def autoencoder_forward_ref(x, params):
    """Plain-JAX reference of the same forward pass (for a sanity check)."""
    n_layers = len(params) // 2
    h = x.astype(jnp.float32)
    for i in range(n_layers):
        w = params[2 * i].astype(jnp.float32)        # (out, in)
        b = params[2 * i + 1].astype(jnp.float32)    # (out,)
        h = h @ w.T + b
        if i not in (n_layers // 2 - 1, n_layers - 1):
            h = jnp.maximum(h, 0.0)
    return h.astype(x.dtype)


if __name__ == "__main__":
    INPUT_SHAPE = 16   # in_features of the first encoder Linear
    LATENT_SHAPE = 4
    BATCH = 16

    key = jax.random.PRNGKey(0)
    key, kx = jax.random.split(key)
    x = jax.random.normal(kx, (BATCH, INPUT_SHAPE), jnp.float32)

    params = init_params(key, INPUT_SHAPE, LATENT_SHAPE)

    out = jax.block_until_ready(autoencoder_forward(x, params))

    ref = autoencoder_forward_ref(x, params)
    assert out.shape == (BATCH, INPUT_SHAPE)
    assert jnp.allclose(out, ref, atol=1e-5, rtol=1e-5), "Pallas kernel mismatch vs JAX reference"

    print("KERNEL_OK")
</pallas_src>

<mosaic_0001>
module attributes {stable_mosaic.version = 11 : i64} {
  func.func @autoencoder_kernel(%arg0: i32, %arg1: memref<16x16xf32, #tpu.memory_space<vmem>>, %arg2: memref<64x16xf32, #tpu.memory_space<vmem>>, %arg3: memref<64x1xf32, #tpu.memory_space<vmem>>, %arg4: memref<32x64xf32, #tpu.memory_space<vmem>>, %arg5: memref<32x1xf32, #tpu.memory_space<vmem>>, %arg6: memref<16x32xf32, #tpu.memory_space<vmem>>, %arg7: memref<16x1xf32, #tpu.memory_space<vmem>>, %arg8: memref<8x16xf32, #tpu.memory_space<vmem>>, %arg9: memref<8x1xf32, #tpu.memory_space<vmem>>, %arg10: memref<4x8xf32, #tpu.memory_space<vmem>>, %arg11: memref<4x1xf32, #tpu.memory_space<vmem>>, %arg12: memref<8x4xf32, #tpu.memory_space<vmem>>, %arg13: memref<8x1xf32, #tpu.memory_space<vmem>>, %arg14: memref<16x8xf32, #tpu.memory_space<vmem>>, %arg15: memref<16x1xf32, #tpu.memory_space<vmem>>, %arg16: memref<32x16xf32, #tpu.memory_space<vmem>>, %arg17: memref<32x1xf32, #tpu.memory_space<vmem>>, %arg18: memref<64x32xf32, #tpu.memory_space<vmem>>, %arg19: memref<64x1xf32, #tpu.memory_space<vmem>>, %arg20: memref<64x16xf32, #tpu.memory_space<vmem>>, %arg21: memref<1x16xf32, #tpu.memory_space<vmem>>, %arg22: memref<16x16xf32, #tpu.memory_space<vmem>>) attributes {dimension_semantics = [#tpu.dimension_semantics<parallel>], iteration_bounds = array<i64: 1>, scalar_prefetch = 0 : i64, scratch_operands = 0 : i64, tpu.core_type = #tpu.core_type<tc>, window_params = [{transform_indices = @transform_0, window_bounds = array<i64: 16, 16>}, {pipeline_mode = #tpu.pipeline_mode<synchronous>, transform_indices = @transform_1, window_bounds = array<i64: 64, 16>}, {pipeline_mode = #tpu.pipeline_mode<synchronous>, transform_indices = @transform_2, window_bounds = array<i64: 64, 1>}, {pipeline_mode = #tpu.pipeline_mode<synchronous>, transform_indices = @transform_3, window_bounds = array<i64: 32, 64>}, {pipeline_mode = #tpu.pipeline_mode<synchronous>, transform_indices = @transform_4, window_bounds = array<i64: 32, 1>}, {pipeline_mode = #tpu.pipeline_mode<synchronous>, transform_indices = @transform_5, window_bounds = array<i64: 16, 32>}, {pipeline_mode = #tpu.pipeline_mode<synchronous>, transform_indices = @transform_6, window_bounds = array<i64: 16, 1>}, {pipeline_mode = #tpu.pipeline_mode<synchronous>, transform_indices = @transform_7, window_bounds = array<i64: 8, 16>}, {pipeline_mode = #tpu.pipeline_mode<synchronous>, transform_indices = @transform_8, window_bounds = array<i64: 8, 1>}, {pipeline_mode = #tpu.pipeline_mode<synchronous>, transform_indices = @transform_9, window_bounds = array<i64: 4, 8>}, {pipeline_mode = #tpu.pipeline_mode<synchronous>, transform_indices = @transform_10, window_bounds = array<i64: 4, 1>}, {pipeline_mode = #tpu.pipeline_mode<synchronous>, transform_indices = @transform_11, window_bounds = array<i64: 8, 4>}, {pipeline_mode = #tpu.pipeline_mode<synchronous>, transform_indices = @transform_12, window_bounds = array<i64: 8, 1>}, {pipeline_mode = #tpu.pipeline_mode<synchronous>, transform_indices = @transform_13, window_bounds = array<i64: 16, 8>}, {pipeline_mode = #tpu.pipeline_mode<synchronous>, transform_indices = @transform_14, window_bounds = array<i64: 16, 1>}, {pipeline_mode = #tpu.pipeline_mode<synchronous>, transform_indices = @transform_15, window_bounds = array<i64: 32, 16>}, {pipeline_mode = #tpu.pipeline_mode<synchronous>, transform_indices = @transform_16, window_bounds = array<i64: 32, 1>}, {pipeline_mode = #tpu.pipeline_mode<synchronous>, transform_indices = @transform_17, window_bounds = array<i64: 64, 32>}, {pipeline_mode = #tpu.pipeline_mode<synchronous>, transform_indices = @transform_18, window_bounds = array<i64: 64, 1>}, {pipeline_mode = #tpu.pipeline_mode<synchronous>, transform_indices = @transform_19, window_bounds = array<i64: 64, 16>}, {pipeline_mode = #tpu.pipeline_mode<synchronous>, transform_indices = @transform_20, window_bounds = array<i64: 1, 16>}, {transform_indices = @transform_21, window_bounds = array<i64: 16, 16>}]} {
    %c0 = arith.constant 0 : index
    %c0_0 = arith.constant 0 : index
    %0 = vector.load %arg1[%c0, %c0_0] : memref<16x16xf32, #tpu.memory_space<vmem>>, vector<16x16xf32>
    %c0_1 = arith.constant 0 : index
    %c0_2 = arith.constant 0 : index
    %1 = vector.load %arg2[%c0_1, %c0_2] : memref<64x16xf32, #tpu.memory_space<vmem>>, vector<64x16xf32>
    %c0_3 = arith.constant 0 : index
    %c0_4 = arith.constant 0 : index
    %2 = vector.load %arg3[%c0_3, %c0_4] : memref<64x1xf32, #tpu.memory_space<vmem>>, vector<64x1xf32>
    "tpu.trace_start"() <{level = 10 : i32, message = "oi,bi->ob"}> : () -> ()
    %cst = arith.constant dense<0.000000e+00> : vector<64x16xf32>
    %3 = tpu.matmul %1, %0, %cst {dimension_numbers = #tpu.dot_dimension_numbers<[1], [1], [0], [0], [0, 0, 1, 0], [], []>} : vector<64x16xf32>, vector<16x16xf32>, vector<64x16xf32> -> vector<64x16xf32>
    "tpu.trace_stop"() : () -> ()
    %4 = vector.broadcast %2 : vector<64x1xf32> to vector<64x16xf32>
    %5 = arith.addf %3, %4 : vector<64x16xf32>
    %cst_5 = arith.constant 0.000000e+00 : f32
    %6 = vector.broadcast %cst_5 : f32 to vector<64x16xf32>
    %7 = arith.maximumf %5, %6 : vector<64x16xf32>
    %c0_6 = arith.constant 0 : index
    %c0_7 = arith.constant 0 : index
    %8 = vector.load %arg4[%c0_6, %c0_7] : memref<32x64xf32, #tpu.memory_space<vmem>>, vector<32x64xf32>
    %c0_8 = arith.constant 0 : index
    %c0_9 = arith.constant 0 : index
    %9 = vector.load %arg5[%c0_8, %c0_9] : memref<32x1xf32, #tpu.memory_space<vmem>>, vector<32x1xf32>
    %cst_10 = arith.constant dense<0.000000e+00> : vector<32x16xf32>
    %10 = tpu.matmul %8, %7, %cst_10 {dimension_numbers = #tpu.dot_dimension_numbers<[1], [0], [0], [1], [0, 0, 1, 1], [], []>} : vector<32x64xf32>, vector<64x16xf32>, vector<32x16xf32> -> vector<32x16xf32>
    %11 = vector.broadcast %9 : vector<32x1xf32> to vector<32x16xf32>
    %12 = arith.addf %10, %11 : vector<32x16xf32>
    %cst_11 = arith.constant 0.000000e+00 : f32
    %13 = vector.broadcast %cst_11 : f32 to vector<32x16xf32>
    %14 = arith.maximumf %12, %13 : vector<32x16xf32>
    %c0_12 = arith.constant 0 : index
    %c0_13 = arith.constant 0 : index
    %15 = vector.load %arg6[%c0_12, %c0_13] : memref<16x32xf32, #tpu.memory_space<vmem>>, vector<16x32xf32>
    %c0_14 = arith.constant 0 : index
    %c0_15 = arith.constant 0 : index
    %16 = vector.load %arg7[%c0_14, %c0_15] : memref<16x1xf32, #tpu.memory_space<vmem>>, vector<16x1xf32>
    %cst_16 = arith.constant dense<0.000000e+00> : vector<16x16xf32>
    %17 = tpu.matmul %15, %14, %cst_16 {dimension_numbers = #tpu.dot_dimension_numbers<[1], [0], [0], [1], [0, 0, 1, 1], [], []>} : vector<16x32xf32>, vector<32x16xf32>, vector<16x16xf32> -> vector<16x16xf32>
    %18 = vector.broadcast %16 : vector<16x1xf32> to vector<16x16xf32>
    %19 = arith.addf %17, %18 : vector<16x16xf32>
    %cst_17 = arith.constant 0.000000e+00 : f32
    %20 = vector.broadcast %cst_17 : f32 to vector<16x16xf32>
    %21 = arith.maximumf %19, %20 : vector<16x16xf32>
    %c0_18 = arith.constant 0 : index
    %c0_19 = arith.constant 0 : index
    %22 = vector.load %arg8[%c0_18, %c0_19] : memref<8x16xf32, #tpu.memory_space<vmem>>, vector<8x16xf32>
    %c0_20 = arith.constant 0 : index
    %c0_21 = arith.constant 0 : index
    %23 = vector.load %arg9[%c0_20, %c0_21] : memref<8x1xf32, #tpu.memory_space<vmem>>, vector<8x1xf32>
    %cst_22 = arith.constant dense<0.000000e+00> : vector<8x16xf32>
    %24 = tpu.matmul %22, %21, %cst_22 {dimension_numbers = #tpu.dot_dimension_numbers<[1], [0], [0], [1], [0, 0, 1, 1], [], []>} : vector<8x16xf32>, vector<16x16xf32>, vector<8x16xf32> -> vector<8x16xf32>
    %25 = vector.broadcast %23 : vector<8x1xf32> to vector<8x16xf32>
    %26 = arith.addf %24, %25 : vector<8x16xf32>
    %cst_23 = arith.constant 0.000000e+00 : f32
    %27 = vector.broadcast %cst_23 : f32 to vector<8x16xf32>
    %28 = arith.maximumf %26, %27 : vector<8x16xf32>
    %c0_24 = arith.constant 0 : index
    %c0_25 = arith.constant 0 : index
    %29 = vector.load %arg10[%c0_24, %c0_25] : memref<4x8xf32, #tpu.memory_space<vmem>>, vector<4x8xf32>
    %c0_26 = arith.constant 0 : index
    %c0_27 = arith.constant 0 : index
    %30 = vector.load %arg11[%c0_26, %c0_27] : memref<4x1xf32, #tpu.memory_space<vmem>>, vector<4x1xf32>
    %cst_28 = arith.constant dense<0.000000e+00> : vector<4x16xf32>
    %31 = tpu.matmul %29, %28, %cst_28 {dimension_numbers = #tpu.dot_dimension_numbers<[1], [0], [0], [1], [0, 0, 1, 1], [], []>} : vector<4x8xf32>, vector<8x16xf32>, vector<4x16xf32> -> vector<4x16xf32>
    %32 = vector.broadcast %30 : vector<4x1xf32> to vector<4x16xf32>
    %33 = arith.addf %31, %32 : vector<4x16xf32>
    %c0_29 = arith.constant 0 : index
    %c0_30 = arith.constant 0 : index
    %34 = vector.load %arg12[%c0_29, %c0_30] : memref<8x4xf32, #tpu.memory_space<vmem>>, vector<8x4xf32>
    %c0_31 = arith.constant 0 : index
    %c0_32 = arith.constant 0 : index
    %35 = vector.load %arg13[%c0_31, %c0_32] : memref<8x1xf32, #tpu.memory_space<vmem>>, vector<8x1xf32>
    %cst_33 = arith.constant dense<0.000000e+00> : vector<8x16xf32>
    %36 = tpu.matmul %34, %33, %cst_33 {dimension_numbers = #tpu.dot_dimension_numbers<[1], [0], [0], [1], [0, 0, 1, 1], [], []>} : vector<8x4xf32>, vector<4x16xf32>, vector<8x16xf32> -> vector<8x16xf32>
    %37 = vector.broadcast %35 : vector<8x1xf32> to vector<8x16xf32>
    %38 = arith.addf %36, %37 : vector<8x16xf32>
    %cst_34 = arith.constant 0.000000e+00 : f32
    %39 = vector.broadcast %cst_34 : f32 to vector<8x16xf32>
    %40 = arith.maximumf %38, %39 : vector<8x16xf32>
    %c0_35 = arith.constant 0 : index
    %c0_36 = arith.constant 0 : index
    %41 = vector.load %arg14[%c0_35, %c0_36] : memref<16x8xf32, #tpu.memory_space<vmem>>, vector<16x8xf32>
    %c0_37 = arith.constant 0 : index
    %c0_38 = arith.constant 0 : index
    %42 = vector.load %arg15[%c0_37, %c0_38] : memref<16x1xf32, #tpu.memory_space<vmem>>, vector<16x1xf32>
    %cst_39 = arith.constant dense<0.000000e+00> : vector<16x16xf32>
    %43 = tpu.matmul %41, %40, %cst_39 {dimension_numbers = #tpu.dot_dimension_numbers<[1], [0], [0], [1], [0, 0, 1, 1], [], []>} : vector<16x8xf32>, vector<8x16xf32>, vector<16x16xf32> -> vector<16x16xf32>
    %44 = vector.broadcast %42 : vector<16x1xf32> to vector<16x16xf32>
    %45 = arith.addf %43, %44 : vector<16x16xf32>
    %cst_40 = arith.constant 0.000000e+00 : f32
    %46 = vector.broadcast %cst_40 : f32 to vector<16x16xf32>
    %47 = arith.maximumf %45, %46 : vector<16x16xf32>
    %c0_41 = arith.constant 0 : index
    %c0_42 = arith.constant 0 : index
    %48 = vector.load %arg16[%c0_41, %c0_42] : memref<32x16xf32, #tpu.memory_space<vmem>>, vector<32x16xf32>
    %c0_43 = arith.constant 0 : index
    %c0_44 = arith.constant 0 : index
    %49 = vector.load %arg17[%c0_43, %c0_44] : memref<32x1xf32, #tpu.memory_space<vmem>>, vector<32x1xf32>
    %cst_45 = arith.constant dense<0.000000e+00> : vector<32x16xf32>
    %50 = tpu.matmul %48, %47, %cst_45 {dimension_numbers = #tpu.dot_dimension_numbers<[1], [0], [0], [1], [0, 0, 1, 1], [], []>} : vector<32x16xf32>, vector<16x16xf32>, vector<32x16xf32> -> vector<32x16xf32>
    %51 = vector.broadcast %49 : vector<32x1xf32> to vector<32x16xf32>
    %52 = arith.addf %50, %51 : vector<32x16xf32>
    %cst_46 = arith.constant 0.000000e+00 : f32
    %53 = vector.broadcast %cst_46 : f32 to vector<32x16xf32>
    %54 = arith.maximumf %52, %53 : vector<32x16xf32>
    %c0_47 = arith.constant 0 : index
    %c0_48 = arith.constant 0 : index
    %55 = vector.load %arg18[%c0_47, %c0_48] : memref<64x32xf32, #tpu.memory_space<vmem>>, vector<64x32xf32>
    %c0_49 = arith.constant 0 : index
    %c0_50 = arith.constant 0 : index
    %56 = vector.load %arg19[%c0_49, %c0_50] : memref<64x1xf32, #tpu.memory_space<vmem>>, vector<64x1xf32>
    %cst_51 = arith.constant dense<0.000000e+00> : vector<64x16xf32>
    %57 = tpu.matmul %55, %54, %cst_51 {dimension_numbers = #tpu.dot_dimension_numbers<[1], [0], [0], [1], [0, 0, 1, 1], [], []>} : vector<64x32xf32>, vector<32x16xf32>, vector<64x16xf32> -> vector<64x16xf32>
    %58 = vector.broadcast %56 : vector<64x1xf32> to vector<64x16xf32>
    %59 = arith.addf %57, %58 : vector<64x16xf32>
    %cst_52 = arith.constant 0.000000e+00 : f32
    %60 = vector.broadcast %cst_52 : f32 to vector<64x16xf32>
    %61 = arith.maximumf %59, %60 : vector<64x16xf32>
    %c0_53 = arith.constant 0 : index
    %c0_54 = arith.constant 0 : index
    %62 = vector.load %arg20[%c0_53, %c0_54] : memref<64x16xf32, #tpu.memory_space<vmem>>, vector<64x16xf32>
    %c0_55 = arith.constant 0 : index
    %c0_56 = arith.constant 0 : index
    %63 = vector.load %arg21[%c0_55, %c0_56] : memref<1x16xf32, #tpu.memory_space<vmem>>, vector<1x16xf32>
    "tpu.trace_start"() <{level = 10 : i32, message = "ib,io->bo"}> : () -> ()
    %cst_57 = arith.constant dense<0.000000e+00> : vector<16x16xf32>
    %64 = tpu.matmul %61, %62, %cst_57 {dimension_numbers = #tpu.dot_dimension_numbers<[0], [0], [1], [1], [0, 1, 1, 1], [], []>} : vector<64x16xf32>, vector<64x16xf32>, vector<16x16xf32> -> vector<16x16xf32>
    "tpu.trace_stop"() : () -> ()
    %65 = vector.broadcast %63 : vector<1x16xf32> to vector<16x16xf32>
    %66 = arith.addf %64, %65 : vector<16x16xf32>
    %c0_58 = arith.constant 0 : index
    %c0_59 = arith.constant 0 : index
    %67 = vector.load %arg22[%c0_58, %c0_59] : memref<16x16xf32, #tpu.memory_space<vmem>>, vector<16x16xf32>
    tpu.vector_store %arg22[%c0_58, %c0_59], %66 {strides = array<i32>} : memref<16x16xf32, #tpu.memory_space<vmem>>, vector<16x16xf32>,
    return
  }
  func.func @transform_0(%arg0: i32) -> (i32, i32) {
    %c0_i32 = arith.constant 0 : i32
    %c0_i32_0 = arith.constant 0 : i32
    return %arg0, %c0_i32 : i32, i32
  }
  func.func @transform_1(%arg0: i32) -> (i32, i32) {
    %c0_i32 = arith.constant 0 : i32
    %c0_i32_0 = arith.constant 0 : i32
    %c0_i32_1 = arith.constant 0 : i32
    return %c0_i32, %c0_i32_0 : i32, i32
  }
  func.func @transform_2(%arg0: i32) -> (i32, i32) {
    %c0_i32 = arith.constant 0 : i32
    %c0_i32_0 = arith.constant 0 : i32
    %c0_i32_1 = arith.constant 0 : i32
    return %c0_i32, %c0_i32_0 : i32, i32
  }
  func.func @transform_3(%arg0: i32) -> (i32, i32) {
    %c0_i32 = arith.constant 0 : i32
    %c0_i32_0 = arith.constant 0 : i32
    %c0_i32_1 = arith.constant 0 : i32
    return %c0_i32, %c0_i32_0 : i32, i32
  }
  func.func @transform_4(%arg0: i32) -> (i32, i32) {
    %c0_i32 = arith.constant 0 : i32
    %c0_i32_0 = arith.constant 0 : i32
    %c0_i32_1 = arith.constant 0 : i32
    return %c0_i32, %c0_i32_0 : i32, i32
  }
  func.func @transform_5(%arg0: i32) -> (i32, i32) {
    %c0_i32 = arith.constant 0 : i32
    %c0_i32_0 = arith.constant 0 : i32
    %c0_i32_1 = arith.constant 0 : i32
    return %c0_i32, %c0_i32_0 : i32, i32
  }
  func.func @transform_6(%arg0: i32) -> (i32, i32) {
    %c0_i32 = arith.constant 0 : i32
    %c0_i32_0 = arith.constant 0 : i32
    %c0_i32_1 = arith.constant 0 : i32
    return %c0_i32, %c0_i32_0 : i32, i32
  }
  func.func @transform_7(%arg0: i32) -> (i32, i32) {
    %c0_i32 = arith.constant 0 : i32
    %c0_i32_0 = arith.constant 0 : i32
    %c0_i32_1 = arith.constant 0 : i32
    return %c0_i32, %c0_i32_0 : i32, i32
  }
  func.func @transform_8(%arg0: i32) -> (i32, i32) {
    %c0_i32 = arith.constant 0 : i32
    %c0_i32_0 = arith.constant 0 : i32
    %c0_i32_1 = arith.constant 0 : i32
    return %c0_i32, %c0_i32_0 : i32, i32
  }
  func.func @transform_9(%arg0: i32) -> (i32, i32) {
    %c0_i32 = arith.constant 0 : i32
    %c0_i32_0 = arith.constant 0 : i32
    %c0_i32_1 = arith.constant 0 : i32
    return %c0_i32, %c0_i32_0 : i32, i32
  }
  func.func @transform_10(%arg0: i32) -> (i32, i32) {
    %c0_i32 = arith.constant 0 : i32
    %c0_i32_0 = arith.constant 0 : i32
    %c0_i32_1 = arith.constant 0 : i32
    return %c0_i32, %c0_i32_0 : i32, i32
  }
  func.func @transform_11(%arg0: i32) -> (i32, i32) {
    %c0_i32 = arith.constant 0 : i32
    %c0_i32_0 = arith.constant 0 : i32
    %c0_i32_1 = arith.constant 0 : i32
    return %c0_i32, %c0_i32_0 : i32, i32
  }
  func.func @transform_12(%arg0: i32) -> (i32, i32) {
    %c0_i32 = arith.constant 0 : i32
    %c0_i32_0 = arith.constant 0 : i32
    %c0_i32_1 = arith.constant 0 : i32
    return %c0_i32, %c0_i32_0 : i32, i32
  }
  func.func @transform_13(%arg0: i32) -> (i32, i32) {
    %c0_i32 = arith.constant 0 : i32
    %c0_i32_0 = arith.constant 0 : i32
    %c0_i32_1 = arith.constant 0 : i32
    return %c0_i32, %c0_i32_0 : i32, i32
  }
  func.func @transform_14(%arg0: i32) -> (i32, i32) {
    %c0_i32 = arith.constant 0 : i32
    %c0_i32_0 = arith.constant 0 : i32
    %c0_i32_1 = arith.constant 0 : i32
    return %c0_i32, %c0_i32_0 : i32, i32
  }
  func.func @transform_15(%arg0: i32) -> (i32, i32) {
    %c0_i32 = arith.constant 0 : i32
    %c0_i32_0 = arith.constant 0 : i32
    %c0_i32_1 = arith.constant 0 : i32
    return %c0_i32, %c0_i32_0 : i32, i32
  }
  func.func @transform_16(%arg0: i32) -> (i32, i32) {
    %c0_i32 = arith.constant 0 : i32
    %c0_i32_0 = arith.constant 0 : i32
    %c0_i32_1 = arith.constant 0 : i32
    return %c0_i32, %c0_i32_0 : i32, i32
  }
  func.func @transform_17(%arg0: i32) -> (i32, i32) {
    %c0_i32 = arith.constant 0 : i32
    %c0_i32_0 = arith.constant 0 : i32
    %c0_i32_1 = arith.constant 0 : i32
    return %c0_i32, %c0_i32_0 : i32, i32
  }
  func.func @transform_18(%arg0: i32) -> (i32, i32) {
    %c0_i32 = arith.constant 0 : i32
    %c0_i32_0 = arith.constant 0 : i32
    %c0_i32_1 = arith.constant 0 : i32
    return %c0_i32, %c0_i32_0 : i32, i32
  }
  func.func @transform_19(%arg0: i32) -> (i32, i32) {
    %c0_i32 = arith.constant 0 : i32
    %c0_i32_0 = arith.constant 0 : i32
    %c0_i32_1 = arith.constant 0 : i32
    return %c0_i32, %c0_i32_0 : i32, i32
  }
  func.func @transform_20(%arg0: i32) -> (i32, i32) {
    %c0_i32 = arith.constant 0 : i32
    %c0_i32_0 = arith.constant 0 : i32
    %c0_i32_1 = arith.constant 0 : i32
    return %c0_i32, %c0_i32_0 : i32, i32
  }
  func.func @transform_21(%arg0: i32) -> (i32, i32) {
    %c0_i32 = arith.constant 0 : i32
    %c0_i32_0 = arith.constant 0 : i32
    return %arg0, %c0_i32 : i32, i32
  }
}

</mosaic_0001>

<bundles_post_ra>
// kernel: tpu_custom_call.1
= control target key start
LH: loop header
LB: loop body
LE: loop exit
PB: predicated region body
PF: predicated region fallthrough
CT: control target
= control target key end

     0   :  { %s2016_s0 = inlined_call_operand.vmem [shape: f32[16,16], index: 0, kind: input, shape index: {}]   ;;  %s2017_s1 = inlined_call_operand.vmem [shape: f32[64,16], index: 1, kind: input, shape index: {}]   ;;  %s2018_s2 = inlined_call_operand.vmem [shape: f32[64,1], index: 2, kind: input, shape index: {}]   ;;  %s2019_s3 = inlined_call_operand.vmem [shape: f32[32,64], index: 3, kind: input, shape index: {}]   ;;  %s2020_s4 = inlined_call_operand.vmem [shape: f32[32,1], index: 4, kind: input, shape index: {}]   ;;  %s2021_s5 = inlined_call_operand.vmem [shape: f32[16,32], index: 5, kind: input, shape index: {}]   ;;  %s2022_s6 = inlined_call_operand.vmem [shape: f32[16,1], index: 6, kind: input, shape index: {}]   ;;  %s2023_s7 = inlined_call_operand.vmem [shape: f32[8,16], index: 7, kind: input, shape index: {}]   ;;  %s2024_s8 = inlined_call_operand.vmem [shape: f32[8,1], index: 8, kind: input, shape index: {}]   ;;  %s2025_s9 = inlined_call_operand.vmem [shape: f32[4,8], index: 9, kind: input, shape index: {}]   ;;  %s2026_s10 = inlined_call_operand.vmem [shape: f32[4,1], index: 10, kind: input, shape index: {}]   ;;  %s2027_s11 = inlined_call_operand.vmem [shape: f32[8,4], index: 11, kind: input, shape index: {}]   ;;  %s2028_s12 = inlined_call_operand.vmem [shape: f32[8,1], index: 12, kind: input, shape index: {}]   ;;  %s2029_s13 = inlined_call_operand.vmem [shape: f32[16,8], index: 13, kind: input, shape index: {}]   ;;  %s2030_s14 = inlined_call_operand.vmem [shape: f32[16,1], index: 14, kind: input, shape index: {}]   ;;  %s2031_s15 = inlined_call_operand.vmem [shape: f32[32,16], index: 15, kind: input, shape index: {}]   ;;  %s2032_s16 = inlined_call_operand.vmem [shape: f32[32,1], index: 16, kind: input, shape index: {}]   ;;  %s2033_s17 = inlined_call_operand.vmem [shape: f32[64,32], index: 17, kind: input, shape index: {}]   ;;  %s2034_s18 = inlined_call_operand.vmem [shape: f32[64,1], index: 18, kind: input, shape index: {}]   ;;  %s2035_s19 = inlined_call_operand.vmem [shape: f32[64,16], index: 19, kind: input, shape index: {}]   ;;  %s2036_s20 = inlined_call_operand.vmem [shape: f32[1,16], index: 20, kind: input, shape index: {}]   ;;  %s2037_s21 = inlined_call_operand.hbm [shape: f32[16,16], index: 21, kind: output, shape index: {}]  }
   0x1   :  { %2044 = sst [smem:[#allocation5_spill]] %s2016_s0 }
   0x2   :  { %2045 = sst [smem:[#allocation6_spill]] %s2017_s1 }
   0x3   :  { %2046 = sst [smem:[#allocation7_spill]] %s2018_s2 }
   0x4   :  { %2047 = sst [smem:[#allocation8_spill]] %s2019_s3 }
   0x5   :  { %2048 = sst [smem:[#allocation9_spill]] %s2020_s4 }
   0x6   :  { %2049 = sst [smem:[#allocation10_spill]] %s2021_s5 }
   0x7   :  { %s2050_s26 = sld [smem:[#allocation5_spill]]  ;;  %vm127_vm0 = vcmask 130048   ;;  %s2051_s0 = sld [smem:[#allocation6_spill]]  ;;  %v1629_v4 = vmov 0  }
   0x8   :  { %vm1536_vm1 = vmpackc.low %vm127_vm0, %vm127_vm0  ;;  %1603 = vset.pattern.permute.xlu0 %v1629_v4  ;;  %1604 = vset.pattern.permute.xlu1 %v1629_v4  ;;  %s2052_s5 = sld [smem:[#allocation7_spill]] }
   0xd   :  { %v69_v0 = vld [vmem:[%s2050_s26] sm:$0xff]  ;;  %v70_v1 = vld [vmem:[%s2050_s26 + $0x8] sm:$0xff]  ;;  %v73_v10 = vld [vmem:[%s2051_s0 + $0x10] sm:$0xff] }
   0xe   :  { %v71_v2 = vld [vmem:[%s2051_s0] sm:$0xff]  ;;  %v1535_v3 = vpack.c.bf16 %v70_v1, %v69_v0  ;;  %v81_v6 = vld [vmem:[%s2052_s5 + $0x10] sm:$0xff]  ;;  %v80_v7 = vld [vmem:[%s2052_s5 + $0x8] sm:$0xff] }
   0xf   :  { %1419 = vmatprep.mubr.msk.f32.mxu0 %vm127_vm0, %v71_v2  ;;  %v79_v5 = vld [vmem:[%s2052_s5] sm:$0xff]  ;;  %99 = vperm.xlu1 %1604, %v81_v6   ;;  %v82_v8 = vld [vmem:[%s2052_s5 + $0x18] sm:$0xff]  ;;  %v72_v9 = vld [vmem:[%s2051_s0 + $0x8] sm:$0xff] }
  0x10   :  { %1537 = vmatprep.subr.msk.bf16.mxu0 %vm1536_vm1, %v1535_v3  ;;  %89 = vperm.xlu0 %1603, %v79_v5   ;;  %v83_v11 = vld [vmem:[%s2052_s5 + $0x20] sm:$0xff]  ;;  %v84_v12 = vld [vmem:[%s2052_s5 + $0x28] sm:$0xff]  ;;  %v74_v13 = vld [vmem:[%s2051_s0 + $0x18] sm:$0xff] }
  0x11   :  { %1540 = vmatpush3.bf16.xpose.msk.msra.mxu0 %vm1536_vm1, %v1535_v3  ;;  %v75_v14 = vld [vmem:[%s2051_s0 + $0x20] sm:$0xff]  ;;  %v85_v15 = vld [vmem:[%s2052_s5 + $0x30] sm:$0xff]  ;;  %v86_v16 = vld [vmem:[%s2052_s5 + $0x38] sm:$0xff] }
  0x13   :  { %104 = vperm.xlu1 %1604, %v82_v8  }
  0x14   :  { %94 = vperm.xlu0 %1603, %v80_v7  }
  0x17   :  { %114 = vperm.xlu1 %1604, %v84_v12  }
  0x18   :  { %1420 = vmatmul.mubr.msk.f32.vlgmr.msra.gmra.mrb[0].mxu0 %vm127_vm0, %v72_v9  ;;  %109 = vperm.xlu0 %1603, %v83_v11  }
  0x19   :  { %1422 = vmatprep.mubr.msk.f32.mxu0 %vm127_vm0, %v73_v10 }
  0x1a   :  { %26 = vsyncpa [#allocation3], 0  ;;  %v76_v17 = vld [vmem:[%s2051_s0 + $0x28] sm:$0xff]  ;;  %v77_v18 = vld [vmem:[%s2051_s0 + $0x30] sm:$0xff]  ;;  %s2053_s1 = sld [smem:[#allocation9_spill]]  ;;  %s2054_s29 = sld [smem:[#allocation8_spill]] }
  0x1b   :  { %124 = vperm.xlu1 %1604, %v86_v16   ;;  %v78_v21 = vld [vmem:[%s2051_s0 + $0x38] sm:$0xff]  ;;  %v403_v24 = vld [vmem:[%s2022_s6] sm:$0xff]  ;;  %v404_v25 = vld [vmem:[%s2022_s6 + $0x8] sm:$0xff]  ;;  %vm299_vm2 = vcmask 523264   ;;  %vm415_vm3 = vcmask 261120   ;;  %vm1631_vm4 = vmmov 0  }
  0x1c   :  { %1423 = vmatmul.mubr.msk.f32.gmra.mrb[2].mxu0 %vm127_vm0, %v74_v13  ;;  %119 = vperm.xlu0 %1603, %v85_v15   ;;  %v500_v26 = vld [vmem:[%s2024_s8] sm:$0xff]  ;;  %v750_v30 = vld [vmem:[%s2030_s14 + $0x8] sm:$0xff]  ;;  %v850_v33 = vld [vmem:[%s2032_s16 + $0x10] sm:$0xff]  ;;  %vm587_vm5 = vcmask 64512   ;;  %vm672_vm6 = vcmask 1043456   ;;  %vm668_vm7 = vcmask 31744  }
  0x1d   :  { %1425 = vmatprep.mubr.msk.f32.mxu0 %vm127_vm0, %v75_v14  ;;  %v581_v27 = vld [vmem:[%s2026_s10] sm:$0xf]  ;;  %v849_v32 = vld [vmem:[%s2032_s16 + $0x8] sm:$0xff]  ;;  %v851_v34 = vld [vmem:[%s2032_s16 + $0x18] sm:$0xff]  ;;  %s1633_s5 = smov [#allocation2]  }
  0x1e   :  { %v662_v28 = vld [vmem:[%s2028_s12] sm:$0xff]  ;;  %v982_v36 = vld [vmem:[%s2034_s18 + $0x8] sm:$0xff]  ;;  %v983_v37 = vld [vmem:[%s2034_s18 + $0x10] sm:$0xff] }
  0x1f   :  { %v749_v29 = vld [vmem:[%s2030_s14] sm:$0xff]  ;;  %v984_v38 = vld [vmem:[%s2034_s18 + $0x18] sm:$0xff]  ;;  %v986_v40 = vld [vmem:[%s2034_s18 + $0x28] sm:$0xff] }
  0x20   :  { %v275_v19 = vld [vmem:[%s2053_s1] sm:$0xff]  ;;  %v276_v20 = vld [vmem:[%s2053_s1 + $0x8] sm:$0xff]  ;;  %1426 = vmatmul.mubr.msk.f32.gmra.mrb[4].mxu0 %vm127_vm0, %v76_v17  ;;  %v277_v22 = vld [vmem:[%s2053_s1 + $0x10] sm:$0xff] }
  0x21   :  { %1428 = vmatprep.mubr.msk.f32.mxu0 %vm127_vm0, %v77_v18  ;;  %281 = vperm.xlu0 %1603, %v275_v19   ;;  %v278_v23 = vld [vmem:[%s2053_s1 + $0x18] sm:$0xff]  ;;  %v848_v31 = vld [vmem:[%s2032_s16] sm:$0xff]  ;;  %v987_v41 = vld [vmem:[%s2034_s18 + $0x30] sm:$0xff]  ;;  %s2055_s1 = sld [smem:[#allocation10_spill]] }
  0x22   :  { %286 = vperm.xlu1 %1604, %v276_v20   ;;  %v981_v35 = vld [vmem:[%s2034_s18] sm:$0xff]  ;;  %v988_v42 = vld [vmem:[%s2034_s18 + $0x38] sm:$0xff]  ;;  %v272_v16 = vld [vmem:[%s2054_s29 + $0x8] sm:$0xff] }
  0x23   :  { %v985_v39 = vld [vmem:[%s2034_s18 + $0x20] sm:$0xff]  ;;  %v273_v17 = vld [vmem:[%s2054_s29 + $0x10] sm:$0xff]  ;;  %v274_v18 = vld [vmem:[%s2054_s29 + $0x18] sm:$0xff] }
  0x24   :  { %1429 = vmatmul.mubr.msk.f32.gmra.mrb[6].mxu0 %vm127_vm0, %v78_v21  ;;  %v271_v43 = vld [vmem:[%s2054_s29] sm:$0xff] }
  0x25   :  { %291 = vperm.xlu0 %1603, %v277_v22   ;;  %1447 = vmatprep.mubr.msk.f32.mxu1 %vm299_vm2, %v271_v43 }
  0x26   :  { %296 = vperm.xlu1 %1604, %v278_v23  }
  0x27   :  { %v401_v19 = vld [vmem:[%s2055_s1] sm:$0xff] }
  0x28   :  { %1461 = vmatprep.mubr.msk.f32.mxu0 %vm415_vm3, %v401_v19 }
  0x29   :  { %407 = vperm.xlu0 %1603, %v403_v24  }
  0x2a   :  { %412 = vperm.xlu1 %1604, %v404_v25  }
  0x2d   :  { %503 = vperm.xlu0 %1603, %v500_v26  }
  0x2e   :  { %584 = vperm.xlu1 %1604, %v581_v27  }
  0x31   :  { %665 = vperm.xlu0 %1603, %v662_v28  }
  0x32   :  { %753 = vperm.xlu1 %1604, %v749_v29  }
  0x35   :  { %758 = vperm.xlu0 %1603, %v750_v30  }
  0x36   :  { %854 = vperm.xlu1 %1604, %v848_v31  }
  0x39   :  { %859 = vperm.xlu0 %1603, %v849_v32  }
  0x3a   :  { %864 = vperm.xlu1 %1604, %v850_v33  }
  0x3d   :  { %869 = vperm.xlu0 %1603, %v851_v34  }
  0x3e   :  { %991 = vperm.xlu1 %1604, %v981_v35  }
  0x41   :  { %996 = vperm.xlu0 %1603, %v982_v36  }
  0x42   :  { %1001 = vperm.xlu1 %1604, %v983_v37  }
  0x45   :  { %1006 = vperm.xlu0 %1603, %v984_v38   ;;  %v402_v38 = vld [vmem:[%s2055_s1 + $0x8] sm:$0xff]  ;;  %s1301_s1 = sshll.u32 %s1633_s5, 4  ;;  %s1302_s1 = int_to_ptr.vmem [resolvable:$true] %s1301_s1 }
  0x46   :  { %1011 = vperm.xlu1 %1604, %v985_v39   ;;  %v1630_v39 = vmov 0.0|0.0   ;;  %s1605_s24 = scalar_lea.vmem %s1302_s1, 256  ;;  %p1610_p1 = scmp.lt.s32.totalorder %s1302_s1, %s1302_s1 }
  0x47   :  { %p1606_p0 = scmp.ne.s32.totalorder %s1302_s1, %s1605_s24  ;;  %p1611_p2 = scmp.lt.s32.totalorder %s1605_s24, %s1605_s24 }
  0x49   :  { %1016 = vperm.xlu0 %1603, %v986_v40   ;;  %v1632_v40 = vmov 0.0   ;;  %p1612_p3 = por %p1611_p2, %p1610_p1 }
  0x4a   :  { %1021 = vperm.xlu1 %1604, %v987_v41  }
  0x4b   :  { %p1613_p4 = pnand %p1612_p3, %p1606_p0 }
  0x4d   :  { %1026 = vperm.xlu0 %1603, %v988_v42  }
  0x8e   :  { %v100_v45 = vpop.permute.xlu1 %99 }
  0x8f   :  { %v90_v44 = vpop.permute.xlu0 %89 }
  0x92   :  { %v105_v47 = vpop.permute.xlu1 %104 }
  0x93   :  { %v95_v46 = vpop.permute.xlu0 %94 }
  0x96   :  { %v115_v57 = vpop.permute.xlu1 %114 }
  0x97   :  { %v110_v60 = vpop.permute.xlu0 %109 }
  0x9a   :  { %v125_v5 = vpop.permute.xlu1 %124 }
  0x9b   :  { %v120_v8 = vpop.permute.xlu0 %119 }
  0xa0   :  { %v282_v21 = vpop.permute.xlu0 %281 }
  0xa1   :  { %v287_v20 = vpop.permute.xlu1 %286 }
  0xa4   :  { %v292_v30 = vpop.permute.xlu0 %291 }
  0xa5   :  { %v297_v27 = vpop.permute.xlu1 %296 }
  0xa8   :  { %v408_v43 = vpop.permute.xlu0 %407 }
  0xa9   :  { %v413_v41 = vpop.permute.xlu1 %412 }
  0xeb   :  { %v1421_v48 = vpop.f32.mrb[0].mxu0 }
  0xec   :  { %v230_v49 = vadd.f32 %v1421_v48, %v95_v46  ;;  %v224_v50 = vpop.f32.mrb[1].mxu0 }
  0xed   :  { %v225_v51 = vadd.f32 %v224_v50, %v90_v44  ;;  %v499_v50 = vld [vmem:[%s2023_s7] sm:$0xff] }
  0xee   :  { %v264_v52 = vmax.f32 %v230_v49, 0.0 }
  0xef   :  { %v263_v53 = vmax.f32 %v225_v51, 0.0  ;;  %v1424_v54 = vpop.f32.mrb[2].mxu0  ;;  %v504_v51 = vpop.permute.xlu0 %503 }
  0xf0   :  { %v240_v55 = vadd.f32 %v1424_v54, %v105_v47  ;;  %v234_v56 = vpop.f32.mrb[3].mxu0 }
  0xf1   :  { %v235_v58 = vadd.f32 %v234_v56, %v100_v45  ;;  %v1541_v59 = vpack.c.bf16 %v264_v52, %v263_v53  ;;  %v580_v56 = vld [vmem:[%s2025_s9] sm:$0xf] }
  0xf2   :  { %v266_v61 = vmax.f32 %v240_v55, 0.0 }
  0xf3   :  { %v265_v62 = vmax.f32 %v235_v58, 0.0  ;;  %v1427_v63 = vpop.f32.mrb[4].mxu0  ;;  %1542 = vmatprep.subr.bf16.mxu1 %v1541_v59 }
  0xf4   :  { %v250_v0 = vadd.f32 %v1427_v63, %v115_v57  ;;  %v244_v1 = vpop.f32.mrb[5].mxu0  ;;  %1544 = vmatpush3.bf16.msra.mxu1 %v1541_v59  ;;  %v585_v57 = vpop.permute.xlu1 %584 }
  0xf5   :  { %v1545_v2 = vpack.c.bf16 %v266_v61, %v265_v62  ;;  %v245_v3 = vadd.f32 %v244_v1, %v110_v60  ;;  %v661_v60 = vld [vmem:[%s2027_s11] sm:$0xff]  ;;  %v666_v63 = vpop.permute.xlu0 %665 }
  0xf6   :  { %v268_v4 = vmax.f32 %v250_v0, 0.0  ;;  %v747_v62 = vld [vmem:[%s2029_s13] sm:$0xff] }
  0xf7   :  { %v267_v6 = vmax.f32 %v245_v3, 0.0  ;;  %v1430_v7 = vpop.f32.mrb[6].mxu0  ;;  %1546 = vmatprep.subr.bf16.mxu1 %v1545_v2 }
  0xf8   :  { %v260_v9 = vadd.f32 %v1430_v7, %v125_v5  ;;  %v254_v10 = vpop.f32.mrb[7].mxu0  ;;  %1548 = vmatpush3.bf16.msra.mxu1 %v1545_v2  ;;  %v844_v5 = vld [vmem:[%s2031_s15] sm:$0xff] }
  0xf9   :  { %v1549_v11 = vpack.c.bf16 %v268_v4, %v267_v6  ;;  %v255_v12 = vadd.f32 %v254_v10, %v120_v8  ;;  %v748_v4 = vld [vmem:[%s2029_s13 + $0x8] sm:$0xff]  ;;  %v759_v6 = vpop.permute.xlu0 %758  ;;  %v754_v8 = vpop.permute.xlu1 %753 }
  0xfa   :  { %v270_v13 = vmax.f32 %v260_v9, 0.0 }
  0xfb   :  { %v269_v14 = vmax.f32 %v255_v12, 0.0  ;;  %1550 = vmatprep.subr.bf16.mxu1 %v1549_v11 }
  0xfc   :  { %1552 = vmatpush3.bf16.msra.mxu1 %v1549_v11 }
  0xfd   :  { %v1553_v15 = vpack.c.bf16 %v270_v13, %v269_v14  ;;  %v860_v19 = vpop.permute.xlu0 %859 }
  0xff   :  { %1554 = vmatprep.subr.bf16.mxu1 %v1553_v15 }
 0x100   :  { %1556 = vmatpush3.bf16.msra.mxu1 %v1553_v15  ;;  %v845_v15 = vld [vmem:[%s2031_s15 + $0x8] sm:$0xff] }
 0x101   :  { %1565 = vmatprep.subr.bf16.mxu1 %v1630_v39  ;;  %v976_v39 = vld [vmem:[%s2033_s17 + $0x18] sm:$0xff] }
 0x103   :  { %1448 = vmatmul.mubr.msk.f32.vlgmr.msra.gmra.mrb[0].mxu1 %vm299_vm2, %v272_v16  ;;  %v846_v16 = vld [vmem:[%s2031_s15 + $0x10] sm:$0xff] }
 0x104   :  { %1450 = vmatprep.mubr.msk.f32.mxu1 %vm299_vm2, %v273_v17  ;;  %v847_v17 = vld [vmem:[%s2031_s15 + $0x18] sm:$0xff] }
 0x107   :  { %1451 = vmatmul.mubr.msk.f32.gmra.mrb[2].mxu1 %vm299_vm2, %v274_v18  ;;  %v973_v18 = vld [vmem:[%s2033_s17] sm:$0xff] }
 0x108   :  { %1468 = vmatprep.mubr.msk.f32.mxu1 %vm1631_vm4, %v1632_v40 }
 0x1d6   :  { %v1449_v22 = vpop.f32.mrb[0].mxu1 }
 0x1d7   :  { %v384_v23 = vadd.f32 %v1449_v22, %v287_v20  ;;  %v378_v24 = vpop.f32.mrb[1].mxu1  ;;  %v855_v20 = vpop.permute.xlu1 %854 }
 0x1d8   :  { %v379_v25 = vadd.f32 %v378_v24, %v282_v21 }
 0x1d9   :  { %v398_v26 = vmax.f32 %v384_v23, 0.0 }
 0x1da   :  { %v397_v28 = vmax.f32 %v379_v25, 0.0  ;;  %v1452_v29 = vpop.f32.mrb[2].mxu1 }
 0x1db   :  { %v394_v31 = vadd.f32 %v1452_v29, %v297_v27  ;;  %v388_v32 = vpop.f32.mrb[3].mxu1  ;;  %v865_v29 = vpop.permute.xlu1 %864 }
 0x1dc   :  { %v1557_v33 = vpack.c.bf16 %v398_v26, %v397_v28  ;;  %v389_v34 = vadd.f32 %v388_v32, %v292_v30  ;;  %v870_v26 = vpop.permute.xlu0 %869 }
 0x1dd   :  { %v400_v35 = vmax.f32 %v394_v31, 0.0 }
 0x1de   :  { %v399_v36 = vmax.f32 %v389_v34, 0.0  ;;  %1558 = vmatprep.subr.bf16.mxu0 %v1557_v33 }
 0x1df   :  { %1560 = vmatpush3.bf16.msra.mxu0 %v1557_v33 }
 0x1e0   :  { %v1561_v37 = vpack.c.bf16 %v400_v35, %v399_v36 }
 0x1e2   :  { %1562 = vmatprep.subr.bf16.mxu0 %v1561_v37 }
 0x1e3   :  { %1564 = vmatpush3.bf16.msra.mxu0 %v1561_v37  ;;  %v974_v37 = vld [vmem:[%s2033_s17 + $0x8] sm:$0xff] }
 0x1e4   :  { %1471 = vmatprep.subr.mxu0 %v1632_v40 }
 0x1e6   :  { %1462 = vmatmul.mubr.msk.f32.vlgmr.msra.gmra.mrb[8].mxu0 %vm415_vm3, %v402_v38  ;;  %v975_v38 = vld [vmem:[%s2033_s17 + $0x10] sm:$0xff] }
 0x1e7   :  { %1473 = vmatprep.mubr.msk.f32.mxu0 %vm1631_vm4, %v1632_v40 }
 0x2b9   :  { %v1463_v42 = vpop.f32.mrb[8].mxu0 }
 0x2ba   :  { %v494_v44 = vadd.f32 %v1463_v42, %v413_v41  ;;  %v488_v45 = vpop.f32.mrb[9].mxu0  ;;  %v978_v41 = vld [vmem:[%s2033_s17 + $0x28] sm:$0xff]  ;;  %v979_v42 = vld [vmem:[%s2033_s17 + $0x30] sm:$0xff] }
 0x2bb   :  { %v489_v46 = vadd.f32 %v488_v45, %v408_v43  ;;  %v980_v43 = vld [vmem:[%s2033_s17 + $0x38] sm:$0xff]  ;;  %v1167_v45 = vld [vmem:[%s2035_s19 + $0x8] sm:$0xff] }
 0x2bc   :  { %v498_v47 = vmax.f32 %v494_v44, 0.0  ;;  %v1166_v44 = vld [vmem:[%s2035_s19] sm:$0xff] }
 0x2bd   :  { %v497_v48 = vmax.f32 %v489_v46, 0.0  ;;  %v1168_v46 = vld [vmem:[%s2035_s19 + $0x10] sm:$0xff] }
 0x2bf   :  { %v1566_v49 = vpack.c.bf16 %v498_v47, %v497_v48  ;;  %v1580_v47 = vpack.c.bf16 %v1167_v45, %v1166_v44  ;;  %v1169_v48 = vld [vmem:[%s2035_s19 + $0x18] sm:$0xff] }
 0x2c1   :  { %1567 = vmatpush3.bf16.msra.mxu1 %v1566_v49  ;;  %v1584_v49 = vpack.c.bf16 %v1169_v48, %v1168_v46 }
 0x2c2   :  { %1476 = vmatprep.subr.mxu1 %v1632_v40 }
 0x2c4   :  { %1469 = vmatmul.mubr.msk.f32.vlgmr.msra.gmra.mrb[4].mxu1 %vm127_vm0, %v499_v50  ;;  %v1170_v50 = vld [vmem:[%s2035_s19 + $0x20] sm:$0xff] }
 0x2c5   :  { %1478 = vmatprep.mubr.msk.f32.mxu1 %vm1631_vm4, %v1632_v40  ;;  %v977_v40 = vld [vmem:[%s2033_s17 + $0x20] sm:$0xff] }
 0x397   :  { %v575_v52 = vpop.f32.mrb[4].mxu1 }
 0x398   :  { %v576_v53 = vadd.f32 %v575_v52, %v504_v51  ;;  %v1470_v54 = vpop.f32.mrb[5].mxu1  ;;  %v1171_v51 = vld [vmem:[%s2035_s19 + $0x28] sm:$0xff] }
 0x399   :  { %v1588_v52 = vpack.c.bf16 %v1171_v51, %v1170_v50  ;;  %v992_v54 = vpop.permute.xlu1 %991 }
 0x39a   :  { %v579_v55 = vmax.f32 %v576_v53, 0.0 }
 0x39c   :  { %1472 = vmatpush3.msra.mxu0 %v579_v55 }
 0x39d   :  { %1474 = vmatmul.mubr.msk.f32.vlgmr.msra.gmra.mrb[10].mxu0 %vm587_vm5, %v580_v56 }
 0x39e   :  { %1483 = vmatprep.mubr.msk.f32.mxu0 %vm587_vm5, %v747_v62  ;;  %v1173_v62 = vld [vmem:[%s2035_s19 + $0x38] sm:$0xff] }
 0x470   :  { %v657_v58 = vpop.f32.mrb[10].mxu0 }
 0x471   :  { %v658_v59 = vadd.f32 %v657_v58, %v585_v57  ;;  %v1475_v61 = vpop.f32.mrb[11].mxu0  ;;  %v997_v57 = vpop.permute.xlu0 %996 }
 0x472   :  { %v1172_v61 = vld [vmem:[%s2035_s19 + $0x30] sm:$0xff] }
 0x473   :  { %1477 = vmatpush3.msk.msra.mxu1 %vm672_vm6, %v658_v59 }
 0x474   :  { %1479 = vmatmul.mubr.msk.f32.vlgmr.msra.gmra.mrb[6].mxu1 %vm668_vm7, %v661_v60 }
 0x475   :  { %1490 = vmatprep.mubr.msk.f32.mxu1 %vm127_vm0, %v844_v5 }
 0x547   :  { %v742_v0 = vpop.f32.mrb[6].mxu1 }
 0x548   :  { %v743_v1 = vadd.f32 %v742_v0, %v666_v63  ;;  %v1480_v2 = vpop.f32.mrb[7].mxu1  ;;  %v1592_v0 = vpack.c.bf16 %v1173_v62, %v1172_v61 }
 0x54a   :  { %v746_v3 = vmax.f32 %v743_v1, 0.0  ;;  %v1002_v1 = vpop.permute.xlu1 %1001 }
 0x54c   :  { %1481 = vmatprep.subr.mxu0 %v746_v3 }
 0x54d   :  { %1482 = vmatpush3.msra.mxu0 %v746_v3 }
 0x54e   :  { %1484 = vmatmul.mubr.msk.f32.vlgmr.msra.gmra.mrb[12].mxu0 %vm587_vm5, %v748_v4 }
 0x54f   :  { %1504 = vmatprep.mubr.msk.f32.mxu0 %vm415_vm3, %v973_v18 }
 0x621   :  { %v1485_v7 = vpop.f32.mrb[12].mxu0 }
 0x622   :  { %v839_v9 = vadd.f32 %v1485_v7, %v759_v6  ;;  %v833_v10 = vpop.f32.mrb[13].mxu0  ;;  %v1007_v6 = vpop.permute.xlu0 %1006 }
 0x623   :  { %v834_v11 = vadd.f32 %v833_v10, %v754_v8 }
 0x624   :  { %v843_v12 = vmax.f32 %v839_v9, 0.0 }
 0x625   :  { %v842_v13 = vmax.f32 %v834_v11, 0.0  ;;  %v1012_v11 = vpop.permute.xlu1 %1011 }
 0x627   :  { %v1568_v14 = vpack.c.bf16 %v843_v12, %v842_v13 }
 0x629   :  { %1569 = vmatprep.subr.bf16.mxu1 %v1568_v14 }
 0x62a   :  { %1571 = vmatpush3.bf16.msra.mxu1 %v1568_v14  ;;  %v1017_v14 = vpop.permute.xlu0 %1016 }
 0x62b   :  { %1581 = vmatprep.subr.bf16.mxu1 %v1580_v47 }
 0x62d   :  { %1491 = vmatmul.mubr.msk.f32.vlgmr.msra.gmra.mrb[8].mxu1 %vm127_vm0, %v845_v15 }
 0x62e   :  { %1493 = vmatprep.mubr.msk.f32.mxu1 %vm127_vm0, %v846_v16  ;;  %1583 = vmatpush3.bf16.msra.mxu1 %v1580_v47 }
 0x62f   :  { %1585 = vmatprep.subr.bf16.mxu1 %v1584_v49 }
 0x631   :  { %1494 = vmatmul.mubr.msk.f32.gmra.mrb[10].mxu1 %vm127_vm0, %v847_v17  ;;  %v1022_v17 = vpop.permute.xlu1 %1021 }
 0x632   :  { %1587 = vmatpush3.bf16.msra.mxu1 %v1584_v49 }
 0x633   :  { %1589 = vmatprep.subr.bf16.mxu1 %v1588_v52 }
 0x636   :  { %1591 = vmatpush3.bf16.msra.mxu1 %v1588_v52 }
 0x637   :  { %1593 = vmatprep.subr.bf16.mxu1 %v1592_v0 }
 0x63a   :  { %1595 = vmatpush3.bf16.msra.mxu1 %v1592_v0 }
 0x700   :  { %v1492_v21 = vpop.f32.mrb[8].mxu1 }
 0x701   :  { %v956_v22 = vadd.f32 %v1492_v21, %v860_v19  ;;  %v950_v23 = vpop.f32.mrb[9].mxu1 }
 0x702   :  { %v951_v24 = vadd.f32 %v950_v23, %v855_v20  ;;  %v1027_v20 = vpop.permute.xlu0 %1026 }
 0x703   :  { %v970_v25 = vmax.f32 %v956_v22, 0.0 }
 0x704   :  { %v969_v27 = vmax.f32 %v951_v24, 0.0  ;;  %v1495_v28 = vpop.f32.mrb[10].mxu1 }
 0x705   :  { %v966_v30 = vadd.f32 %v1495_v28, %v870_v26  ;;  %v960_v31 = vpop.f32.mrb[11].mxu1  ;;  %v1346_v26 = vld [vmem:[%s2036_s20] ss:$0 sm:$0xff] }
 0x706   :  { %v1572_v32 = vpack.c.bf16 %v970_v25, %v969_v27  ;;  %v961_v33 = vadd.f32 %v960_v31, %v865_v29 }
 0x707   :  { %v972_v34 = vmax.f32 %v966_v30, 0.0 }
 0x708   :  { %v971_v35 = vmax.f32 %v961_v33, 0.0  ;;  %1573 = vmatprep.subr.bf16.mxu0 %v1572_v32 }
 0x709   :  { %1575 = vmatpush3.bf16.msra.mxu0 %v1572_v32 }
 0x70a   :  { %v1576_v36 = vpack.c.bf16 %v972_v34, %v971_v35 }
 0x70c   :  { %1577 = vmatprep.subr.bf16.mxu0 %v1576_v36 }
 0x70d   :  { %1579 = vmatpush3.bf16.msra.mxu0 %v1576_v36 }
 0x710   :  { %1505 = vmatmul.mubr.msk.f32.vlgmr.msra.gmra.mrb[14].mxu0 %vm415_vm3, %v974_v37 }
 0x711   :  { %1507 = vmatprep.mubr.msk.f32.mxu0 %vm415_vm3, %v975_v38 }
 0x714   :  { %1508 = vmatmul.mubr.msk.f32.gmra.mrb[16].mxu0 %vm415_vm3, %v976_v39 }
 0x715   :  { %1510 = vmatprep.mubr.msk.f32.mxu0 %vm415_vm3, %v977_v40 }
 0x718   :  { %1511 = vmatmul.mubr.msk.f32.gmra.mrb[18].mxu0 %vm415_vm3, %v978_v41 }
 0x719   :  { %1513 = vmatprep.mubr.msk.f32.mxu0 %vm415_vm3, %v979_v42 }
 0x71c   :  { %1514 = vmatmul.mubr.msk.f32.gmra.mrb[20].mxu0 %vm415_vm3, %v980_v43 }
 0x7e3   :  { %v1506_v53 = vpop.f32.mrb[14].mxu0 }
 0x7e4   :  { %v1119_v55 = vpop.f32.mrb[15].mxu0  ;;  %v1125_v58 = vadd.f32 %v1506_v53, %v997_v57 }
 0x7e5   :  { %v1120_v56 = vadd.f32 %v1119_v55, %v992_v54 }
 0x7e6   :  { %v1159_v2 = vmax.f32 %v1125_v58, 0.0 }
 0x7e7   :  { %v1158_v59 = vmax.f32 %v1120_v56, 0.0  ;;  %v1509_v60 = vpop.f32.mrb[16].mxu0 }
 0x7e8   :  { %v1129_v63 = vpop.f32.mrb[17].mxu0  ;;  %v1135_v7 = vadd.f32 %v1509_v60, %v1007_v6 }
 0x7e9   :  { %1181 = vxpose.xlu1.b32.start [1/8] (short) (narrow) %v1158_v59, 16  ;;  %v1130_v3 = vadd.f32 %v1129_v63, %v1002_v1 }
 0x7ea   :  { %v1161_v12 = vmax.f32 %v1135_v7, 0.0 }
 0x7eb   :  { %v1512_v4 = vpop.f32.mrb[18].mxu0  ;;  %v1160_v8 = vmax.f32 %v1130_v3, 0.0 }
 0x7ec   :  { %v1139_v5 = vpop.f32.mrb[19].mxu0  ;;  %v1145_v15 = vadd.f32 %v1512_v4, %v1017_v14 }
 0x7ed   :  { %1182 = vxpose.xlu1.b32.cont [2/8] (short) (narrow) %v1159_v2, 16  ;;  %v1140_v13 = vadd.f32 %v1139_v5, %v1012_v11 }
 0x7ee   :  { %v1163_v18 = vmax.f32 %v1145_v15, 0.0 }
 0x7ef   :  { %v1515_v9 = vpop.f32.mrb[20].mxu0  ;;  %v1162_v16 = vmax.f32 %v1140_v13, 0.0 }
 0x7f0   :  { %v1149_v10 = vpop.f32.mrb[21].mxu0  ;;  %v1155_v21 = vadd.f32 %v1515_v9, %v1027_v20 }
 0x7f1   :  { %1183 = vxpose.xlu1.b32.cont [3/8] (short) (narrow) %v1160_v8, 16  ;;  %v1150_v19 = vadd.f32 %v1149_v10, %v1022_v17 }
 0x7f2   :  { %v1165_v23 = vmax.f32 %v1155_v21, 0.0 }
 0x7f3   :  { %v1164_v22 = vmax.f32 %v1150_v19, 0.0 }
 0x7f5   :  { %1184 = vxpose.xlu1.b32.cont [4/8] (short) (narrow) %v1161_v12, 16 }
 0x7f9   :  { %1185 = vxpose.xlu1.b32.cont [5/8] (short) (narrow) %v1162_v16, 16 }
 0x7fd   :  { %1186 = vxpose.xlu1.b32.cont [6/8] (short) (narrow) %v1163_v18, 16 }
 0x801   :  { %1187 = vxpose.xlu1.b32.cont [7/8] (short) (narrow) %v1164_v22, 16 }
 0x805   :  { %1188 = vxpose.xlu1.b32.end [8/8] (short) (narrow) %v1165_v23, 16 }
 0x869   :  { %v1197_v24 = vpop.trf.xlu1 }
 0x86a   :  { %1532 = vmatprep.mubr.msk.f32.mxu1 %vm299_vm2, %v1197_v24 }
 0x86d   :  { %v1198_v25 = vpop.trf.xlu1 }
 0x86e   :  { %1533 = vmatmul.mubr.msk.f32.vlgmr.msra.gmra.mrb[12].mxu1 %vm299_vm2, %v1198_v25 }
 0x941   :  { %v1534_v27 = vpop.f32.mrb[12].mxu1 }
 0x942   :  { %v1291_v28 = vadd.f32 %v1534_v27, %v1346_v26  ;;  %v1285_v29 = vpop.f32.mrb[13].mxu1 }
 0x943   :  { %v1286_v30 = vadd.f32 %v1346_v26, %v1285_v29 }
 0x944   :  { %1295 = vst.msk [vmem:[#allocation2 + $0x8] sm:$0xff] %vm127_vm0, %v1291_v28 }
 0x945   :  { %1294 = vst.msk [vmem:[#allocation2] sm:$0xff] %vm127_vm0, %v1286_v30 }
 0x946   :  { %1616 = shalt.err (!%p1613_p4)
}
 0x947   :  { %s1617_s16 = scalar_lea.hbm %s2037_s21, 256 }
 0x948   :  { %p1618_p5 = scmp.ne.s32.totalorder %s2037_s21, %s1617_s16  ;;  %p1621_p6 = scmp.lt.u32.totalorder %s1617_s16, %s2037_s21 }
 0x94a   :  { %p1623_p7 = pnand %p1621_p6, %p1618_p5 }
 0x94c   :  { %1626 = shalt.err (!%p1623_p7)
}
 0x94d   :  { %s1634_s27 = smov 128   ;;  %s1635_s8 = smov 8  }
 0x94e   :  { %1307 = dma.vmem_to_hbm [thread:$0]  %s1302_s1, 256, %s2037_s21, [#allocation3], %s1634_s27, %s1634_s27, %s1635_s8  }
 0x94f   :  { %1627 = dma.done.wait [#allocation3], 256  }
 0x950   :  { %1628 = vsyncadd [#allocation3], 4294967040 }
 0x951   :  { %1311 = vsyncpa [#allocation3], 1 }

</bundles_post_ra>
